<compile_context>
chip_gen: v5e
topology: v5e:2x2
jax: 0.10.0
libtpu: 0.0.40
codegen_flags: <defaults>
</compile_context>

<pallas_src>
import functools

import jax
import jax.numpy as jnp
from jax import lax
from jax.experimental import pallas as pl
from jax.experimental.pallas import tpu as pltpu  # noqa: F401  (kept for TPU-specific tuning hooks)

# ---- small synthetic hyperparameters ----
VOCAB = 20          # len(word_vocab)
EMB = 32            # hyper.emb_size
HID = 32            # hyper.hidden_size
N_BIO = 5           # len(bio_vocab); emission classes = N_BIO - 1
BIO_EMB = 8         # hyper.bio_emb_size
N_REL = 4           # len(relation_vocab)
REL_EMB = 16        # hyper.rel_emb_size
PAD_ID = 0
B, L = 2, 8         # batch, max_text_len


# ----------------------------------------------------------------------------
# Pallas kernel: fused emission + multi-head-selection head (whole batch).
# ----------------------------------------------------------------------------
def _selection_kernel(o_ref, wproj_ref, bproj_ref, wuv_ref, buv_ref, rel_ref,
                      emi_ref, logits_ref, *, batch, seq_len, n_emi, d_rel):
    o = o_ref[...]                                            # (B*L, Hc)

    # Fused projection: [emission | selection_u | selection_v] in ONE matmul.
    proj = (jnp.dot(o, wproj_ref[...], preferred_element_type=jnp.float32)
            + bproj_ref[...])                                 # (B*L, C + 2*Dr)

    emi_ref[...] = proj[:, :n_emi]                            # (B*L, C)

    u = jnp.maximum(proj[:, n_emi:n_emi + d_rel], 0.0)        # (B*L, Dr)
    v = jnp.maximum(proj[:, n_emi + d_rel:n_emi + 2 * d_rel], 0.0)

    # Fused selection_uv split: [u | v] @ blockdiag(W_uv_u, W_uv_v) -> [a | c]
    ac = jnp.dot(jnp.concatenate([u, v], axis=-1), wuv_ref[...],
                 preferred_element_type=jnp.float32)          # (B*L, 2*Dr)
    a = ac[:, :d_rel] + buv_ref[...]                          # bias hoisted once
    c = ac[:, d_rel:]

    # uv[b, i, j, :] = relu(a[b, j] + c[b, i]); flatten to (B*L*L, Dr).
    a4 = a.reshape(batch, 1, seq_len, d_rel)
    c4 = c.reshape(batch, seq_len, 1, d_rel)
    uv = jnp.maximum(a4 + c4, 0.0).reshape(batch * seq_len * seq_len, d_rel)

    # Single fused contraction + single lane-dense store:
    # logits_T[r, b*L*L + i*L + j] = sum_h rel[r, h] * uv[b, i, j, h]
    logits_ref[...] = lax.dot_general(
        rel_ref[...], uv, (((1,), (1,)), ((), ())),
        preferred_element_type=jnp.float32)                   # (R, B*L*L)


def selection_head(o_cat, params):
    """Run the Pallas head. o_cat: (B, L, HID+BIO_EMB) f32."""
    Bb, Ll, Hc = o_cat.shape
    Dr = params['wu'].shape[1]
    R = params['rel_emb'].shape[0]
    C = params['w_emi'].shape[1]

    # Zero-pad emission weight over the bio-embedding rows, then fuse the three
    # projections into one (Hc, C + 2*Dr) weight (and matching bias).
    w_emi_pad = jnp.concatenate(
        [params['w_emi'], jnp.zeros((Hc - params['w_emi'].shape[0], C), jnp.float32)],
        axis=0)
    w_proj = jnp.concatenate([w_emi_pad, params['wu'], params['wv']], axis=1)
    b_proj = jnp.concatenate([params['b_emi'], params['bu'], params['bv']], axis=1)

    # Block-diagonal fusion of the u-part / v-part of selection_uv.
    zeros = jnp.zeros((Dr, Dr), jnp.float32)
    w_uv_blk = jnp.block([[params['wuv_u'], zeros],
                          [zeros, params['wuv_v']]])          # (2*Dr, 2*Dr)

    o_flat = o_cat.reshape(Bb * Ll, Hc)

    kern = functools.partial(_selection_kernel, batch=Bb, seq_len=Ll,
                             n_emi=C, d_rel=Dr)

    # Grid collapsed to a single step: at B=2, L=8 everything fits in one VMEM
    # block and per-step overhead dominated.  TODO(synk): for large B, add a
    # leading "parallel" batch grid axis so v7x's two TensorCores split the work.
    emi_flat, logits_t = pl.pallas_call(
        kern,
        out_shape=[jax.ShapeDtypeStruct((Bb * Ll, C), jnp.float32),
                   jax.ShapeDtypeStruct((R, Bb * Ll * Ll), jnp.float32)],
    )(o_flat, w_proj, b_proj, w_uv_blk, params['buv'], params['rel_emb'])

    emi = emi_flat.reshape(Bb, Ll, C)
    # (R, B, L, L) -> (B, L, R, L)   (free layout plumbing outside the kernel)
    logits = logits_t.reshape(R, Bb, Ll, Ll).transpose(1, 2, 0, 3)
    return emi, logits


# ----------------------------------------------------------------------------
# Plain-JAX glue: embeddings, BiLSTM encoder, masked BCE loss.
# ----------------------------------------------------------------------------
def lstm_direction(x, w_ih, w_hh, b_ih, b_hh, reverse=False):
    """Single-direction LSTM (PyTorch gate order i,f,g,o). x: (B, L, E)."""
    Bb, Ll, E = x.shape
    Hh = w_hh.shape[1]

    # Hoist the input projection out of the scan: one (B*L, E) @ (E, 4H) GEMM.
    x_proj = (x.reshape(Bb * Ll, E) @ w_ih.T + (b_ih + b_hh)).reshape(Bb, Ll, 4 * Hh)
    xs = jnp.swapaxes(x_proj, 0, 1)                           # (L, B, 4H)
    if reverse:
        xs = xs[::-1]

    def step(carry, xp_t):
        h, c = carry
        gates = xp_t + h @ w_hh.T                             # (B, 4H)
        i, f, g, o = jnp.split(gates, 4, axis=-1)
        i = jax.nn.sigmoid(i)
        f = jax.nn.sigmoid(f)
        g = jnp.tanh(g)
        o = jax.nn.sigmoid(o)
        c = f * c + i * g
        h = o * jnp.tanh(c)
        return (h, c), h

    init = (jnp.zeros((Bb, Hh), jnp.float32), jnp.zeros((Bb, Hh), jnp.float32))
    _, hs = lax.scan(step, init, xs, unroll=True)
    if reverse:
        hs = hs[::-1]
    return jnp.swapaxes(hs, 0, 1)                             # (B, L, H)


def masked_bce_loss(mask, logits, gold):
    m = mask.astype(jnp.float32)
    sel_mask = m[:, :, None, None] * m[:, None, None, :]      # (B, L, 1, L)
    sel_mask = jnp.broadcast_to(sel_mask, logits.shape)
    gold = gold.astype(jnp.float32)
    # numerically-stable BCE-with-logits
    bce = jnp.maximum(logits, 0.0) - logits * gold + jnp.log1p(jnp.exp(-jnp.abs(logits)))
    return jnp.sum(bce * sel_mask) / jnp.maximum(jnp.sum(m), 1.0)


def multi_head_selection_forward(params, tokens, bio_gold, selection_gold):
    """is_train=True forward path of MultiHeadSelection."""
    mask = tokens != PAD_ID                                   # (B, L) bool

    embedded = params['word_emb'][tokens]                     # (B, L, E)

    fwd = lstm_direction(embedded, params['w_ih_f'], params['w_hh_f'],
                         params['b_ih_f'], params['b_hh_f'], reverse=False)
    bwd = lstm_direction(embedded, params['w_ih_b'], params['w_hh_b'],
                         params['b_ih_b'], params['b_hh_b'], reverse=True)
    # o = sum(torch.split(o, hidden_size, dim=2)) / 2  == (fwd + bwd) / 2
    o = (fwd + bwd) * 0.5                                     # (B, L, H)

    tag_emb = params['bio_emb'][bio_gold]                     # (B, L, BIO_EMB)
    o_cat = jnp.concatenate([o, tag_emb], axis=-1)            # (B, L, H + BIO_EMB)

    emi, selection_logits = selection_head(o_cat, params)

    # TODO(synk): linear-chain CRF negative log-likelihood (self.tagger) has no
    # clean Pallas equivalent here; crf_loss is reported as 0.
    crf_loss = jnp.float32(0.0)
    selection_loss = masked_bce_loss(mask, selection_logits, selection_gold)
    loss = crf_loss + selection_loss

    return {
        'crf_loss': crf_loss,
        'selection_loss': selection_loss,
        'loss': loss,
        'emission': emi,
        'selection_logits': selection_logits,
    }


def init_params(key):
    keys = jax.random.split(key, 20)

    def n(k, shape, scale=0.1):
        return (scale * jax.random.normal(k, shape)).astype(jnp.float32)

    Hc = HID + BIO_EMB
    p = {
        'word_emb': n(keys[0], (VOCAB, EMB)),
        'rel_emb':  n(keys[1], (N_REL, REL_EMB)),
        'bio_emb':  n(keys[2], (N_BIO, BIO_EMB)),
        # BiLSTM (forward / backward directions)
        'w_ih_f': n(keys[3], (4 * HID, EMB)), 'w_hh_f': n(keys[4], (4 * HID, HID)),
        'b_ih_f': n(keys[5], (4 * HID,)),     'b_hh_f': n(keys[6], (4 * HID,)),
        'w_ih_b': n(keys[7], (4 * HID, EMB)), 'w_hh_b': n(keys[8], (4 * HID, HID)),
        'b_ih_b': n(keys[9], (4 * HID,)),     'b_hh_b': n(keys[10], (4 * HID,)),
        # selection heads (stored as (in, out))
        'wu': n(keys[11], (Hc, REL_EMB)), 'bu': n(keys[12], (1, REL_EMB)),
        'wv': n(keys[13], (Hc, REL_EMB)), 'bv': n(keys[14], (1, REL_EMB)),
        # selection_uv: Linear(2*Dr, Dr) split into u-part / v-part weights
        'wuv_u': n(keys[15], (REL_EMB, REL_EMB)),
        'wuv_v': n(keys[16], (REL_EMB, REL_EMB)),
        'buv':   n(keys[17], (1, REL_EMB)),
        # emission: Linear(hidden, len(bio_vocab) - 1)
        'w_emi': n(keys[18], (HID, N_BIO - 1)),
        'b_emi': n(keys[19], (1, N_BIO - 1)),
    }
    return p


if __name__ == "__main__":
    key = jax.random.PRNGKey(0)
    pkey, tkey, bkey, skey = jax.random.split(key, 4)

    params = init_params(pkey)

    tokens = jax.random.randint(tkey, (B, L), 1, VOCAB)
    tokens = tokens.at[1, L - 2:].set(PAD_ID)                 # some padding for the mask
    bio_gold = jax.random.randint(bkey, (B, L), 0, N_BIO - 1)
    selection_gold = jax.random.bernoulli(
        skey, 0.05, (B, L, N_REL, L)).astype(jnp.float32)

    out = multi_head_selection_forward(params, tokens, bio_gold, selection_gold)
    jax.block_until_ready(out['selection_logits'])
    jax.block_until_ready(out['loss'])
    print("KERNEL_OK")
</pallas_src>

<mosaic_0001>
module attributes {stable_mosaic.version = 11 : i64} {
  func.func @_selection_kernel(%arg0: memref<16x40xf32, #tpu.memory_space<vmem>>, %arg1: memref<40x36xf32, #tpu.memory_space<vmem>>, %arg2: memref<1x36xf32, #tpu.memory_space<vmem>>, %arg3: memref<32x32xf32, #tpu.memory_space<vmem>>, %arg4: memref<1x16xf32, #tpu.memory_space<vmem>>, %arg5: memref<4x16xf32, #tpu.memory_space<vmem>>, %arg6: memref<16x4xf32, #tpu.memory_space<vmem>>, %arg7: memref<4x128xf32, #tpu.memory_space<vmem>>) attributes {dimension_semantics = [], scalar_prefetch = 0 : i64, scratch_operands = 0 : i64, tpu.core_type = #tpu.core_type<tc>} {
    %c0 = arith.constant 0 : index
    %c0_0 = arith.constant 0 : index
    %0 = vector.load %arg0[%c0, %c0_0] : memref<16x40xf32, #tpu.memory_space<vmem>>, vector<16x40xf32>
    %c0_1 = arith.constant 0 : index
    %c0_2 = arith.constant 0 : index
    %1 = vector.load %arg1[%c0_1, %c0_2] : memref<40x36xf32, #tpu.memory_space<vmem>>, vector<40x36xf32>
    %cst = arith.constant dense<0.000000e+00> : vector<16x36xf32>
    %2 = tpu.matmul %0, %1, %cst {dimension_numbers = #tpu.dot_dimension_numbers<[1], [0], [0], [1], [0, 0, 1, 1], [], []>} : vector<16x40xf32>, vector<40x36xf32>, vector<16x36xf32> -> vector<16x36xf32>
    %c0_3 = arith.constant 0 : index
    %c0_4 = arith.constant 0 : index
    %3 = vector.load %arg2[%c0_3, %c0_4] : memref<1x36xf32, #tpu.memory_space<vmem>>, vector<1x36xf32>
    %4 = vector.broadcast %3 : vector<1x36xf32> to vector<16x36xf32>
    %5 = arith.addf %2, %4 : vector<16x36xf32>
    %6 = vector.extract_strided_slice %5 {offsets = [0, 0], sizes = [16, 4], strides = [1, 1]} : vector<16x36xf32> to vector<16x4xf32>
    %c0_5 = arith.constant 0 : index
    %c0_6 = arith.constant 0 : index
    %7 = vector.load %arg6[%c0_5, %c0_6] : memref<16x4xf32, #tpu.memory_space<vmem>>, vector<16x4xf32>
    tpu.vector_store %arg6[%c0_5, %c0_6], %6 {strides = array<i32>} : memref<16x4xf32, #tpu.memory_space<vmem>>, vector<16x4xf32>,
    %8 = vector.extract_strided_slice %5 {offsets = [0, 4], sizes = [16, 16], strides = [1, 1]} : vector<16x36xf32> to vector<16x16xf32>
    %cst_7 = arith.constant 0.000000e+00 : f32
    %9 = vector.broadcast %cst_7 : f32 to vector<16x16xf32>
    %10 = arith.maximumf %8, %9 : vector<16x16xf32>
    %11 = vector.extract_strided_slice %5 {offsets = [0, 20], sizes = [16, 16], strides = [1, 1]} : vector<16x36xf32> to vector<16x16xf32>
    %cst_8 = arith.constant 0.000000e+00 : f32
    %12 = vector.broadcast %cst_8 : f32 to vector<16x16xf32>
    %13 = arith.maximumf %11, %12 : vector<16x16xf32>
    %14 = tpu.concatenate %10, %13 in 1 : vector<16x16xf32>, vector<16x16xf32> -> vector<16x32xf32>
    %c0_9 = arith.constant 0 : index
    %c0_10 = arith.constant 0 : index
    %15 = vector.load %arg3[%c0_9, %c0_10] : memref<32x32xf32, #tpu.memory_space<vmem>>, vector<32x32xf32>
    %cst_11 = arith.constant dense<0.000000e+00> : vector<16x32xf32>
    %16 = tpu.matmul %14, %15, %cst_11 {dimension_numbers = #tpu.dot_dimension_numbers<[1], [0], [0], [1], [0, 0, 1, 1], [], []>} : vector<16x32xf32>, vector<32x32xf32>, vector<16x32xf32> -> vector<16x32xf32>
    %17 = vector.extract_strided_slice %16 {offsets = [0, 0], sizes = [16, 16], strides = [1, 1]} : vector<16x32xf32> to vector<16x16xf32>
    %c0_12 = arith.constant 0 : index
    %c0_13 = arith.constant 0 : index
    %18 = vector.load %arg4[%c0_12, %c0_13] : memref<1x16xf32, #tpu.memory_space<vmem>>, vector<1x16xf32>
    %19 = vector.broadcast %18 : vector<1x16xf32> to vector<16x16xf32>
    %20 = arith.addf %17, %19 : vector<16x16xf32>
    %21 = vector.extract_strided_slice %16 {offsets = [0, 16], sizes = [16, 16], strides = [1, 1]} : vector<16x32xf32> to vector<16x16xf32>
    %22 = vector.shape_cast %20 : vector<16x16xf32> to vector<2x1x8x16xf32>
    %23 = vector.shape_cast %21 : vector<16x16xf32> to vector<2x8x1x16xf32>
    %24 = vector.broadcast %22 : vector<2x1x8x16xf32> to vector<2x8x8x16xf32>
    %25 = vector.broadcast %23 : vector<2x8x1x16xf32> to vector<2x8x8x16xf32>
    %26 = arith.addf %24, %25 : vector<2x8x8x16xf32>
    %cst_14 = arith.constant 0.000000e+00 : f32
    %27 = vector.broadcast %cst_14 : f32 to vector<2x8x8x16xf32>
    %28 = arith.maximumf %26, %27 : vector<2x8x8x16xf32>
    %29 = vector.shape_cast %28 : vector<2x8x8x16xf32> to vector<128x16xf32>
    %c0_15 = arith.constant 0 : index
    %c0_16 = arith.constant 0 : index
    %30 = vector.load %arg5[%c0_15, %c0_16] : memref<4x16xf32, #tpu.memory_space<vmem>>, vector<4x16xf32>
    %cst_17 = arith.constant dense<0.000000e+00> : vector<4x128xf32>
    %31 = tpu.matmul %30, %29, %cst_17 {dimension_numbers = #tpu.dot_dimension_numbers<[1], [1], [0], [0], [0, 0, 1, 0], [], []>} : vector<4x16xf32>, vector<128x16xf32>, vector<4x128xf32> -> vector<4x128xf32>
    %c0_18 = arith.constant 0 : index
    %c0_19 = arith.constant 0 : index
    %32 = vector.load %arg7[%c0_18, %c0_19] : memref<4x128xf32, #tpu.memory_space<vmem>>, vector<4x128xf32>
    tpu.vector_store %arg7[%c0_18, %c0_19], %31 {strides = array<i32>} : memref<4x128xf32, #tpu.memory_space<vmem>>, vector<4x128xf32>,
    return
  }
}

</mosaic_0001>

<bundles_post_ra>
// kernel: tpu_custom_call.1
= control target key start
LH: loop header
LB: loop body
LE: loop exit
PB: predicated region body
PF: predicated region fallthrough
CT: control target
= control target key end

     0   :  { %13 = vsyncpa [#allocation3], 0  ;;  %s709_s0 = inlined_call_operand.hbm [shape: f32[16,40], index: 0, kind: input, shape index: {}]   ;;  %s710_s1 = inlined_call_operand.hbm [shape: f32[40,36], index: 1, kind: input, shape index: {}]   ;;  %s711_s2 = inlined_call_operand.hbm [shape: f32[1,36], index: 2, kind: input, shape index: {}]   ;;  %s712_s3 = inlined_call_operand.hbm [shape: f32[32,32], index: 3, kind: input, shape index: {}]   ;;  %s713_s4 = inlined_call_operand.hbm [shape: f32[1,16], index: 4, kind: input, shape index: {}]   ;;  %s714_s5 = inlined_call_operand.vmem [shape: f32[4,16], index: 5, kind: input, shape index: {}]   ;;  %s715_s6 = inlined_call_operand.vmem [shape: f32[16,4], index: 6, kind: output, shape index: {0}]   ;;  %s716_s7 = inlined_call_operand.hbm [shape: f32[4,128], index: 7, kind: output, shape index: {1}]  }
   0x1   :  { %14 = vsyncpa [#allocation6], 0 }
   0x2   :  { %15 = vsyncpa [#allocation9], 0 }
   0x3   :  { %16 = vsyncpa [#allocation4], 0  ;;  %s34_s26 = sshll.u32 %s710_s1, 4  ;;  %s588_s27 = smov [#allocation5]   ;;  %s35_s26 = int_to_ptr.hbm [resolvable:$true] %s34_s26 }
   0x4   :  { %s36_s28 = sshll.u32 %s588_s27, 4  ;;  %s58_s8 = sshll.u32 %s712_s3, 4  ;;  %s37_s28 = int_to_ptr.vmem [resolvable:$true] %s36_s28  ;;  %s59_s8 = int_to_ptr.hbm [resolvable:$true] %s58_s8 }
   0x5   :  { %s589_s9 = smov 128   ;;  %s590_s10 = smov 8  }
   0x6   :  { %42 = dma.hbm_to_vmem [thread:$0]  %s35_s26, 640, %s37_s28, [#allocation6], %s589_s9, %s589_s9, %s590_s10  }
   0x7   :  { %s591_s11 = smov [#allocation8]   ;;  %s21_s15 = sshll.u32 %s709_s0, 4  ;;  %s22_s15 = int_to_ptr.hbm [resolvable:$true] %s21_s15 }
   0x8   :  { %s60_s12 = sshll.u32 %s591_s11, 4  ;;  %s48_s17 = sshll.u32 %s711_s2, 4  ;;  %s61_s12 = int_to_ptr.vmem [resolvable:$true] %s60_s12  ;;  %s49_s17 = int_to_ptr.hbm [resolvable:$true] %s48_s17 }
   0x9   :  { %66 = dma.hbm_to_vmem [thread:$0]  %s59_s8, 512, %s61_s12, [#allocation9], %s589_s9, %s589_s9, %s590_s10  }
   0xa   :  { %s592_s18 = smov [#allocation2]   ;;  %s593_s3 = smov [#allocation7]  }
   0xb   :  { %s23_s19 = sshll.u32 %s592_s18, 4  ;;  %s50_s20 = sshll.u32 %s593_s3, 4  ;;  %s24_s19 = int_to_ptr.vmem [resolvable:$true] %s23_s19  ;;  %s51_s20 = int_to_ptr.vmem [resolvable:$true] %s50_s20 }
   0xc   :  { %29 = dma.hbm_to_vmem [thread:$0]  %s22_s15, 256, %s24_s19, [#allocation3], %s589_s9, %s589_s9, %s590_s10  }
   0xd   :  { %s72_s23 = sshll.u32 %s713_s4, 4  ;;  %s594_s0 = smov [#allocation10]   ;;  %s73_s23 = int_to_ptr.hbm [resolvable:$true] %s72_s23 }
   0xe   :  { %53 = dma.hbm_to_vmem [thread:$0]  %s49_s17, 16, %s51_s20, [#allocation6]  }
   0xf   :  { %s74_s24 = sshll.u32 %s594_s0, 4  ;;  %s75_s24 = int_to_ptr.vmem [resolvable:$true] %s74_s24 }
  0x10   :  { %77 = dma.hbm_to_vmem [thread:$0]  %s73_s23, 16, %s75_s24, [#allocation9]  }
  0x11   :  { %580 = dma.done.wait [#allocation3], 256  }
  0x12   :  { %581 = vsyncadd [#allocation3], 4294967040 }
  0x13   :  { %582 = dma.done.wait [#allocation6], 656  }
  0x14   :  { %583 = vsyncadd [#allocation6], 4294966640 }
  0x15   :  { %584 = dma.done.wait [#allocation9], 528  }
  0x16   :  { %585 = vsyncadd [#allocation9], 4294966768  ;;  %v106_v0 = vld [vmem:[#allocation5 + $0x20] sm:$0xff]  ;;  %v105_v1 = vld [vmem:[#allocation5 + $0x18] sm:$0xff]  ;;  %vm111_vm0 = vcmask 326656   ;;  %vm141_vm1 = vcmask 31744  }
  0x17   :  { %129 = vmatpush.msra.mxu0 %v106_v0  ;;  %v104_v2 = vld [vmem:[#allocation5 + $0x10] sm:$0xff]  ;;  %v103_v3 = vld [vmem:[#allocation5 + $0x8] sm:$0xff]  ;;  %v102_v4 = vld [vmem:[#allocation5] sm:$0xff]  ;;  %s595_s25 = smov 124   ;;  %vm159_vm2 = vcmask 261120   ;;  %s596_s28 = smov 112  }
  0x18   :  { %v100_v5 = vld [vmem:[#allocation2] sm:$0xff]  ;;  %v101_v6 = vld [vmem:[#allocation2 + $0x8] sm:$0xff]  ;;  %v158_v7 = vld [vmem:[#allocation8 + $0x18] sm:$0xff]  ;;  %vm154_vm3 = vcmask 130048   ;;  %s597_s30 = smov [#allocation11]   ;;  %s389_s11 = sshll.u32 %s716_s7, 4  ;;  %s390_s11 = int_to_ptr.hbm [resolvable:$true] %s389_s11 }
  0x19   :  { %130 = vmatpush.msra.mxu0 %v105_v1  ;;  %v157_v8 = vld [vmem:[#allocation8 + $0x10] sm:$0xff]  ;;  %178 = vmatpush.msra.mxu1 %v158_v7  ;;  %v156_v9 = vld [vmem:[#allocation8 + $0x8] sm:$0xff]  ;;  %v155_v10 = vld [vmem:[#allocation8] sm:$0xff]  ;;  %s387_s8 = sshll.u32 %s597_s30, 4  ;;  %s388_s8 = int_to_ptr.vmem [resolvable:$true] %s387_s8 }
  0x1a   :  { %v434_v11 = vld [vmem:[#allocation7] ss:$0 sm:$0xff]  ;;  %v435_v52 = vld [vmem:[#allocation10] ss:$0 sm:$0xff] }
  0x1b   :  { %131 = vmatpush.msra.mxu0 %v104_v2  ;;  %179 = vmatpush.msra.mxu1 %v157_v8 }
  0x1d   :  { %132 = vmatpush.msra.mxu0 %v103_v3  ;;  %180 = vmatpush.msra.mxu1 %v156_v9 }
  0x1f   :  { %133 = vmatpush.msra.mxu0 %v102_v4  ;;  %181 = vmatpush.msra.mxu1 %v155_v10 }
  0x20   :  { %403 = vmatmul.msk.f32.vlgmr.msra.gmra.mxu0 %vm111_vm0, %v100_v5 }
  0x28   :  { %404 = vmatmul.msk.f32.gmra.mxu0 %vm111_vm0, %v101_v6 }
  0x9d   :  { %v135_v12 = vpop.f32.mrf.mxu0 }
  0x9e   :  { %v136_v13 = vadd.f32 %v434_v11, %v135_v12 }
  0xa0   :  { %142 = vst.msk [vmem:[%s715_s6] sm:$0xff] %vm141_vm1, %v136_v13  ;;  %v144_v14 = vmax.f32 %v136_v13, 0.0 }
  0xa2   :  { %148 = vrot.lane.b32.xlu0 %v144_v14, %s595_s25 }
  0xa5   :  { %v138_v15 = vpop.f32.mrf.mxu0 }
  0xa6   :  { %v139_v16 = vadd.f32 %v434_v11, %v138_v15 }
  0xa8   :  { %143 = vst.msk [vmem:[%s715_s6 + $0x8] sm:$0xff] %vm141_vm1, %v139_v16  ;;  %v145_v17 = vmax.f32 %v139_v16, 0.0 }
  0xaa   :  { %150 = vrot.lane.b32.xlu0 %v145_v17, %s595_s25 }
 0x114   :  { %v149_v18 = vpop.permute.xlu0 %148 }
 0x115   :  { %405 = vmatmul.msk.f32.vlgmr.msra.gmra.mxu1 %vm159_vm2, %v149_v18 }
 0x11c   :  { %v151_v19 = vpop.permute.xlu0 %150 }
 0x11d   :  { %406 = vmatmul.msk.f32.gmra.mxu1 %vm159_vm2, %v151_v19 }
 0x192   :  { %v659_v20 = vpop.f32.mrf.mxu1 }
 0x193   :  { %v201_v35 = vrot.slane %v659_v20, 5  ;;  %v203_v39 = vrot.slane %v659_v20, 7  ;;  %v202_v40 = vrot.slane %v659_v20, 6  ;;  %v198_v41 = vrot.slane %v659_v20, 2 }
 0x194   :  { %v200_v45 = vrot.slane %v659_v20, 4  ;;  %v199_v46 = vrot.slane %v659_v20, 3  ;;  %v197_v49 = vrot.slane %v659_v20, 1  ;;  %v211_v51 = vperm.slane %v659_v20, 0 }
 0x195   :  { %v216_v38 = vperm.slane %v201_v35, 0  ;;  %v218_v42 = vperm.slane %v203_v39, 0  ;;  %v217_v43 = vperm.slane %v202_v40, 0  ;;  %v213_v44 = vperm.slane %v198_v41, 0  ;;  %v307_v39 = vld [vmem:[%s714_s5] sm:$0xf] }
 0x196   :  { %v215_v47 = vperm.slane %v200_v45, 0  ;;  %v214_v48 = vperm.slane %v199_v46, 0  ;;  %v212_v50 = vperm.slane %v197_v49, 0  ;;  %v193_v14 = vadd.f32 %v435_v52, %v659_v20 }
 0x19a   :  { %v186_v21 = vpop.f32.mrf.mxu1 }
 0x19b   :  { %v210_v22 = vrot.slane %v186_v21, 7  ;;  %v208_v23 = vrot.slane %v186_v21, 5  ;;  %v206_v24 = vrot.slane %v186_v21, 3  ;;  %v209_v28 = vrot.slane %v186_v21, 6 }
 0x19c   :  { %v207_v29 = vrot.slane %v186_v21, 4  ;;  %v219_v32 = vperm.slane %v186_v21, 0  ;;  %v205_v33 = vrot.slane %v186_v21, 2  ;;  %v204_v34 = vrot.slane %v186_v21, 1 }
 0x19d   :  { %v226_v25 = vperm.slane %v210_v22, 0  ;;  %v224_v26 = vperm.slane %v208_v23, 0  ;;  %v222_v27 = vperm.slane %v206_v24, 0  ;;  %v225_v30 = vperm.slane %v209_v28, 0 }
 0x19e   :  { %v223_v31 = vperm.slane %v207_v29, 0  ;;  %v221_v36 = vperm.slane %v205_v33, 0  ;;  %v220_v37 = vperm.slane %v204_v34, 0  ;;  %v194_v53 = vadd.f32 %v435_v52, %v186_v21 }
 0x19f   :  { %257 = vrot.lane.b32.xlu1 %v226_v25, %s596_s28  ;;  %253 = vrot.lane.b32.xlu2 %v224_v26, %s596_s28 }
 0x1a0   :  { %249 = vrot.lane.b32.xlu0 %v222_v27, %s596_s28 }
 0x1a7   :  { %255 = vrot.lane.b32.xlu1 %v225_v30, %s596_s28  ;;  %251 = vrot.lane.b32.xlu2 %v223_v31, %s596_s28 }
 0x1a8   :  { %243 = vrot.lane.b32.xlu0 %v219_v32, %s596_s28 }
 0x1af   :  { %247 = vrot.lane.b32.xlu1 %v221_v36, %s596_s28  ;;  %245 = vrot.lane.b32.xlu2 %v220_v37, %s596_s28 }
 0x1b0   :  { %237 = vrot.lane.b32.xlu0 %v216_v38, %s596_s28 }
 0x1b7   :  { %241 = vrot.lane.b32.xlu1 %v218_v42, %s596_s28  ;;  %239 = vrot.lane.b32.xlu2 %v217_v43, %s596_s28 }
 0x1b8   :  { %231 = vrot.lane.b32.xlu0 %v213_v44, %s596_s28 }
 0x1bf   :  { %235 = vrot.lane.b32.xlu1 %v215_v47, %s596_s28  ;;  %233 = vrot.lane.b32.xlu2 %v214_v48, %s596_s28 }
 0x1c7   :  { %229 = vrot.lane.b32.xlu1 %v212_v50, %s596_s28  ;;  %227 = vrot.lane.b32.xlu2 %v211_v51, %s596_s28 }
 0x1f9   :  { %v254_v56 = vpop.permute.xlu2 %253 }
 0x1fa   :  { %v288_v60 = vadd.f32 %v254_v56, %v194_v53 }
 0x1fc   :  { %v304_v63 = vmax.f32 %v288_v60, 0.0 }
 0x201   :  { %v252_v62 = vpop.permute.xlu2 %251 }
 0x202   :  { %v287_v0 = vadd.f32 %v252_v62, %v194_v53 }
 0x204   :  { %v303_v2 = vmax.f32 %v287_v0, 0.0 }
 0x209   :  { %v246_v7 = vpop.permute.xlu2 %245 }
 0x20a   :  { %v284_v8 = vadd.f32 %v246_v7, %v194_v53 }
 0x20c   :  { %v300_v11 = vmax.f32 %v284_v8, 0.0 }
 0x211   :  { %v258_v54 = vpop.permute.xlu1 %257  ;;  %v240_v17 = vpop.permute.xlu2 %239 }
 0x212   :  { %v290_v55 = vadd.f32 %v258_v54, %v194_v53  ;;  %v250_v1 = vpop.permute.xlu0 %249  ;;  %v281_v18 = vadd.f32 %v240_v17, %v193_v14 }
 0x213   :  { %v286_v3 = vadd.f32 %v250_v1, %v194_v53 }
 0x214   :  { %v306_v57 = vmax.f32 %v290_v55, 0.0  ;;  %v297_v22 = vmax.f32 %v281_v18, 0.0 }
 0x215   :  { %v302_v5 = vmax.f32 %v286_v3, 0.0 }
 0x216   :  { %407 = vmatpush.xpose.msk.msra.mxu2 %vm154_vm3, %v306_v57 }
 0x219   :  { %v256_v58 = vpop.permute.xlu1 %255  ;;  %v234_v20 = vpop.permute.xlu2 %233 }
 0x21a   :  { %v289_v59 = vadd.f32 %v256_v58, %v194_v53  ;;  %v244_v10 = vpop.permute.xlu0 %243  ;;  %v278_v27 = vadd.f32 %v234_v20, %v193_v14 }
 0x21b   :  { %v283_v12 = vadd.f32 %v244_v10, %v194_v53 }
 0x21c   :  { %v305_v61 = vmax.f32 %v289_v59, 0.0  ;;  %v294_v30 = vmax.f32 %v278_v27, 0.0 }
 0x21d   :  { %v299_v15 = vmax.f32 %v283_v12, 0.0 }
 0x21e   :  { %408 = vmatpush.xpose.msk.msra.mxu2 %vm154_vm3, %v305_v61 }
 0x221   :  { %v248_v4 = vpop.permute.xlu1 %247  ;;  %v228_v35 = vpop.permute.xlu2 %227 }
 0x222   :  { %409 = vmatpush.xpose.msk.msra.mxu2 %vm154_vm3, %v304_v63  ;;  %v285_v6 = vadd.f32 %v248_v4, %v194_v53  ;;  %v238_v21 = vpop.permute.xlu0 %237  ;;  %v275_v36 = vadd.f32 %v228_v35, %v193_v14 }
 0x223   :  { %v280_v23 = vadd.f32 %v238_v21, %v193_v14 }
 0x224   :  { %v301_v9 = vmax.f32 %v285_v6, 0.0  ;;  %v291_v38 = vmax.f32 %v275_v36, 0.0 }
 0x225   :  { %v296_v25 = vmax.f32 %v280_v23, 0.0 }
 0x226   :  { %410 = vmatpush.xpose.msk.msra.mxu2 %vm154_vm3, %v303_v2 }
 0x229   :  { %v242_v13 = vpop.permute.xlu1 %241 }
 0x22a   :  { %411 = vmatpush.xpose.msk.msra.mxu2 %vm154_vm3, %v302_v5  ;;  %v282_v16 = vadd.f32 %v242_v13, %v193_v14  ;;  %v232_v29 = vpop.permute.xlu0 %231 }
 0x22b   :  { %v277_v31 = vadd.f32 %v232_v29, %v193_v14 }
 0x22c   :  { %v298_v19 = vmax.f32 %v282_v16, 0.0 }
 0x22d   :  { %v293_v33 = vmax.f32 %v277_v31, 0.0 }
 0x22e   :  { %412 = vmatpush.xpose.msk.msra.mxu2 %vm154_vm3, %v301_v9 }
 0x231   :  { %v236_v24 = vpop.permute.xlu1 %235 }
 0x232   :  { %413 = vmatpush.xpose.msk.msra.mxu2 %vm154_vm3, %v300_v11  ;;  %v279_v26 = vadd.f32 %v236_v24, %v193_v14 }
 0x234   :  { %v295_v28 = vmax.f32 %v279_v26, 0.0 }
 0x236   :  { %414 = vmatpush.xpose.msk.msra.mxu2 %vm154_vm3, %v299_v15 }
 0x239   :  { %v230_v32 = vpop.permute.xlu1 %229 }
 0x23a   :  { %415 = vmatpush.xpose.msk.msra.mxu2 %vm154_vm3, %v298_v19  ;;  %v276_v34 = vadd.f32 %v230_v32, %v193_v14 }
 0x23c   :  { %v292_v37 = vmax.f32 %v276_v34, 0.0 }
 0x23e   :  { %416 = vmatpush.xpose.msk.msra.mxu2 %vm154_vm3, %v297_v22 }
 0x242   :  { %417 = vmatpush.xpose.msk.msra.mxu2 %vm154_vm3, %v296_v25 }
 0x246   :  { %418 = vmatpush.xpose.msk.msra.mxu2 %vm154_vm3, %v295_v28 }
 0x24a   :  { %419 = vmatpush.xpose.msk.msra.mxu2 %vm154_vm3, %v294_v30 }
 0x24e   :  { %420 = vmatpush.xpose.msk.msra.mxu2 %vm154_vm3, %v293_v33 }
 0x252   :  { %421 = vmatpush.xpose.msk.msra.mxu2 %vm154_vm3, %v292_v37 }
 0x256   :  { %422 = vmatpush.xpose.msk.msra.mxu2 %vm154_vm3, %v291_v38 }
 0x259   :  { %423 = vmatmul.msk.f32.vlgmr.msra.gmra.mxu2 %vm154_vm3, %v307_v39 }
 0x2dc   :  { %v376_v40 = vpop.f32.mrf.mxu2 }
 0x2dd   :  { %379 = vst [vmem:[#allocation11] sm:$0xf] %v376_v40 }
 0x2de   :  { %392 = dma.vmem_to_hbm [thread:$0]  %s388_s8, 64, %s390_s11, [#allocation4]  }
 0x2df   :  { %586 = dma.done.wait [#allocation4], 64  }
 0x2e0   :  { %587 = vsyncadd [#allocation4], 4294967232 }
 0x2e1   :  { %399 = vsyncpa [#allocation3], 1 }
 0x2e2   :  { %400 = vsyncpa [#allocation6], 1 }
 0x2e3   :  { %401 = vsyncpa [#allocation9], 1 }
 0x2e4   :  { %402 = vsyncpa [#allocation4], 1 }

</bundles_post_ra>
